<compile_context>
chip_gen: v7x
topology: tpu7x:2x2x1
jax: 0.10.0
libtpu: 0.0.40
codegen_flags: <defaults>
</compile_context>

<pallas_src>
import jax
import jax.numpy as jnp
from jax.experimental import pallas as pl
from jax.experimental.pallas import tpu as pltpu


# -----------------------------------------------------------------------------
# helpers
# -----------------------------------------------------------------------------
def _pick_tile(total, target):
    """Largest divisor of `total` that is <= target (prefer multiples of 8)."""
    if total <= target:
        return total
    for t in range(target, 7, -1):
        if t % 8 == 0 and total % t == 0:
            return t
    for t in range(target, 0, -1):
        if total % t == 0:
            return t
    return total


def _compiler_params(dim_sems, est_bytes):
    # Tile-derived VMEM budget (+50% headroom), floored at 8 MiB and capped
    # below v7x's 64 MiB physical VMEM.
    limit = int(min(max(est_bytes * 3 // 2, 8 * 1024 * 1024), 48 * 1024 * 1024))
    return pltpu.CompilerParams(dimension_semantics=dim_sems,
                                vmem_limit_bytes=limit)


# -----------------------------------------------------------------------------
# 1 & 3) fused linear kernel: y = x @ w + b  (full-width MXU, f32 accumulation)
# -----------------------------------------------------------------------------
def _linear_kernel(x_ref, w_ref, b_ref, o_ref):
    y = jnp.dot(x_ref[...], w_ref[...], preferred_element_type=jnp.float32)
    y = y + b_ref[...]                       # bias in f32
    o_ref[...] = y.astype(o_ref.dtype)


def linear_pallas(x2, w, b, *, out_dtype, tile_m=256):
    """x2: (M, Cin); w: (Cin, Cout); b: (1, Cout) f32  ->  (M, Cout)."""
    M, Cin = x2.shape
    _, Cout = w.shape
    tm = _pick_tile(M, tile_m)
    grid = (M // tm,)

    in_sz = jnp.dtype(x2.dtype).itemsize
    w_sz = jnp.dtype(w.dtype).itemsize
    out_sz = jnp.dtype(out_dtype).itemsize
    est = (2 * tm * Cin * in_sz              # double-buffered x tile
           + 2 * tm * Cout * out_sz          # double-buffered out tile
           + Cin * Cout * w_sz + Cout * 4    # single-buffered weights + bias
           + tm * Cout * 4)                  # f32 matmul result

    return pl.pallas_call(
        _linear_kernel,
        out_shape=jax.ShapeDtypeStruct((M, Cout), out_dtype),
        grid=grid,
        in_specs=[
            pl.BlockSpec((tm, Cin), lambda i: (i, 0)),
            # Constant across the grid -> single-buffer (saves VMEM, no re-fetch).
            pl.BlockSpec((Cin, Cout), lambda i: (0, 0),
                         pipeline_mode=pl.Buffered(1)),
            pl.BlockSpec((1, Cout), lambda i: (0, 0),
                         pipeline_mode=pl.Buffered(1)),
        ],
        out_specs=pl.BlockSpec((tm, Cout), lambda i: (i, 0)),
        compiler_params=_compiler_params(("parallel",), est),
    )(x2, w, b)


# -----------------------------------------------------------------------------
# 2) flash-style attention kernel: grid (B*H, q-tiles, kv-tiles)
# -----------------------------------------------------------------------------
def _flash_kernel(q_ref, k_ref, v_ref, o_ref, m_sc, l_sc, acc_sc):
    ki = pl.program_id(2)

    @pl.when(ki == 0)
    def _():
        m_sc[...] = jnp.full_like(m_sc, -jnp.inf)
        l_sc[...] = jnp.zeros_like(l_sc)
        acc_sc[...] = jnp.zeros_like(acc_sc)

    q = q_ref[0]                              # (Tq, hd), scale already folded in
    k = k_ref[0]                              # (Tk, hd)
    v = v_ref[0]                              # (Tk, hd)

    # Scores: contract the last axis of both operands (no materialized k.T).
    s = jax.lax.dot_general(q, k, (((1,), (1,)), ((), ())),
                            preferred_element_type=jnp.float32)   # (Tq, Tk)

    m_prev = m_sc[...]
    m_new = jnp.maximum(m_prev, jnp.max(s, axis=-1, keepdims=True))
    alpha = jnp.exp(m_prev - m_new)           # f32 elementwise (v5e-safe)
    p = jnp.exp(s - m_new)                    # unnormalized probabilities, f32
    l_sc[...] = alpha * l_sc[...] + jnp.sum(p, axis=-1, keepdims=True)
    acc_sc[...] = alpha * acc_sc[...] + jnp.dot(
        p.astype(v.dtype), v, preferred_element_type=jnp.float32)
    m_sc[...] = m_new

    # attn_drop is the eval-mode identity (p = 0.0); nothing to apply.
    @pl.when(ki == pl.num_programs(2) - 1)
    def _():
        # Deferred softmax normalization; exact reciprocal still runs on the EUP.
        o_ref[0] = (acc_sc[...] * pl.reciprocal(l_sc[...], approx=False)
                    ).astype(o_ref.dtype)


def flash_attention_pallas(q, k, v, *, out_dtype, tile_q=128, tile_kv=128):
    """q/k/v: (B*H, N, hd)  ->  context (B*H, N, hd)."""
    BH, N, hd = q.shape
    tq = _pick_tile(N, tile_q)
    tk = _pick_tile(N, tile_kv)
    grid = (BH, N // tq, N // tk)

    qkv_sz = jnp.dtype(q.dtype).itemsize
    out_sz = jnp.dtype(out_dtype).itemsize
    est = (2 * (tq + 2 * tk) * hd * qkv_sz    # double-buffered q/k/v tiles
           + 2 * tq * hd * out_sz             # double-buffered out tile
           + tq * hd * 4 + 2 * tq * 4         # scratch: acc, m, l
           + 2 * tq * tk * 4)                 # s and p intermediates

    return pl.pallas_call(
        _flash_kernel,
        out_shape=jax.ShapeDtypeStruct((BH, N, hd), out_dtype),
        grid=grid,
        in_specs=[
            pl.BlockSpec((1, tq, hd), lambda bh, qi, ki: (bh, qi, 0)),
            pl.BlockSpec((1, tk, hd), lambda bh, qi, ki: (bh, ki, 0)),
            pl.BlockSpec((1, tk, hd), lambda bh, qi, ki: (bh, ki, 0)),
        ],
        out_specs=pl.BlockSpec((1, tq, hd), lambda bh, qi, ki: (bh, qi, 0)),
        scratch_shapes=[
            pltpu.VMEM((tq, 1), jnp.float32),   # running row max
            pltpu.VMEM((tq, 1), jnp.float32),   # running row sum
            pltpu.VMEM((tq, hd), jnp.float32),  # unnormalized context accumulator
        ],
        compiler_params=_compiler_params(
            ("parallel", "parallel", "arbitrary"), est),
    )(q, k, v)


# -----------------------------------------------------------------------------
# full forward pass
# -----------------------------------------------------------------------------
def attention_pallas(x, w_qkv, q_bias, v_bias, w_proj, b_proj,
                     *, num_heads, head_dim,
                     compute_dtype=jnp.bfloat16, out_dtype=None,
                     tile_m=256, tile_q=128, tile_kv=128):
    """x: (B, N, C); w_qkv: (3*D, C) torch layout; w_proj: (C, D) torch layout."""
    B, N, C = x.shape
    H, hd = num_heads, head_dim
    D = H * hd
    scale = head_dim ** (-0.5)
    if out_dtype is None:
        out_dtype = x.dtype

    # ---- one-time parameter prep (f32 math, then cast to compute dtype) -----
    w_qkv_t = w_qkv.T.astype(jnp.float32)                         # (C, 3D)
    col_scale = jnp.concatenate([jnp.full((D,), scale, jnp.float32),
                                 jnp.ones((2 * D,), jnp.float32)])
    w_qkv_t = w_qkv_t * col_scale[None, :]     # fold q-scale in f32, then cast
    b_qkv = jnp.concatenate([q_bias.astype(jnp.float32) * scale,
                             jnp.zeros((D,), jnp.float32),        # k has no bias
                             v_bias.astype(jnp.float32)]).reshape(1, 3 * D)
    w_qkv_c = w_qkv_t.astype(compute_dtype)
    w_proj_c = w_proj.T.astype(compute_dtype)                     # (D, C)
    b_proj2 = b_proj.astype(jnp.float32).reshape(1, C)

    # ---- 1) fused full-width QKV projection: (B*N, C) @ (C, 3D) -------------
    x2 = x.reshape(B * N, C).astype(compute_dtype)   # cast in wrapper: half DMA
    qkv = linear_pallas(x2, w_qkv_c, b_qkv, out_dtype=compute_dtype,
                        tile_m=tile_m)                            # (B*N, 3D)

    # Layout plumbing (wrapper-side, not in-kernel relayouts): head-major q/k/v.
    qkv = qkv.reshape(B, N, 3, H, hd).transpose(2, 0, 3, 1, 4)    # (3, B, H, N, hd)
    q = qkv[0].reshape(B * H, N, hd)
    k = qkv[1].reshape(B * H, N, hd)
    v = qkv[2].reshape(B * H, N, hd)

    # ---- 2) flash attention, tiled over q-tiles and kv-tiles ----------------
    ctx = flash_attention_pallas(q, k, v, out_dtype=compute_dtype,
                                 tile_q=tile_q, tile_kv=tile_kv)  # (B*H, N, hd)

    # ---- 3) fused output projection: (B*N, D) @ (D, C) ----------------------
    ctx2 = ctx.reshape(B, H, N, hd).transpose(0, 2, 1, 3).reshape(B * N, D)
    out = linear_pallas(ctx2, w_proj_c, b_proj2, out_dtype=out_dtype,
                        tile_m=tile_m)                            # (B*N, C)
    # proj_drop is the eval-mode identity; nothing to apply.
    return out.reshape(B, N, C)


# -----------------------------------------------------------------------------
# pure-JAX reference (mirrors the PyTorch forward exactly)
# -----------------------------------------------------------------------------
def attention_ref(x, w_qkv, q_bias, v_bias, w_proj, b_proj,
                  *, num_heads, head_dim):
    B, N, C = x.shape
    scale = head_dim ** (-0.5)
    qkv_bias = jnp.concatenate([q_bias, jnp.zeros_like(v_bias), v_bias])
    qkv = x @ w_qkv.T + qkv_bias                                  # (B, N, 3*D)
    qkv = qkv.reshape(B, N, 3, num_heads, head_dim).transpose(2, 0, 3, 1, 4)
    q, k, v = qkv[0], qkv[1], qkv[2]                              # (B, H, N, hd)
    q = q * scale
    attn = q @ jnp.swapaxes(k, -2, -1)
    attn = jax.nn.softmax(attn, axis=-1)
    out = (attn @ v).transpose(0, 2, 1, 3).reshape(B, N, -1)
    return out @ w_proj.T + b_proj


# TODO(synk): nn.Dropout with p > 0 in training mode (attn_drop / proj_drop) is
# not implemented; forward is the eval-mode identity as in the reference use.

if __name__ == "__main__":
    # Small shapes consistent with the module: dim=32, num_heads=4 -> head_dim=8
    B, N, C = 2, 8, 32
    num_heads, head_dim = 4, 8
    D = num_heads * head_dim

    key = jax.random.PRNGKey(0)
    kx, kq, kqb, kvb, kp, kpb = jax.random.split(key, 6)

    x = jax.random.normal(kx, (B, N, C), dtype=jnp.float32)
    w_qkv = jax.random.normal(kq, (3 * D, C), dtype=jnp.float32) * 0.05
    q_bias = jax.random.normal(kqb, (D,), dtype=jnp.float32) * 0.05
    v_bias = jax.random.normal(kvb, (D,), dtype=jnp.float32) * 0.05
    w_proj = jax.random.normal(kp, (C, D), dtype=jnp.float32) * 0.05
    b_proj = jax.random.normal(kpb, (C,), dtype=jnp.float32) * 0.05

    ref = attention_ref(x, w_qkv, q_bias, v_bias, w_proj, b_proj,
                        num_heads=num_heads, head_dim=head_dim)

    # f32 debug path (exact math, tight tolerance)
    out_f32 = attention_pallas(x, w_qkv, q_bias, v_bias, w_proj, b_proj,
                               num_heads=num_heads, head_dim=head_dim,
                               compute_dtype=jnp.float32)
    out_f32 = jax.block_until_ready(out_f32)
    assert out_f32.shape == (B, N, C)
    assert jnp.allclose(out_f32, ref, atol=1e-3, rtol=1e-3), "f32 mismatch vs reference"

    # bf16 default path (bf16 MXU inputs, f32 accumulation / softmax)
    out_bf16 = attention_pallas(x, w_qkv, q_bias, v_bias, w_proj, b_proj,
                                num_heads=num_heads, head_dim=head_dim,
                                compute_dtype=jnp.bfloat16)
    out_bf16 = jax.block_until_ready(out_bf16)
    assert out_bf16.shape == (B, N, C)
    assert jnp.allclose(out_bf16, ref, atol=3e-2, rtol=3e-2), "bf16 mismatch vs reference"

    print("KERNEL_OK")
</pallas_src>

<mosaic_0001>
module attributes {stable_mosaic.version = 11 : i64} {
  func.func @_linear_kernel(%arg0: i32, %arg1: memref<16x32xf32, #tpu.memory_space<vmem>>, %arg2: memref<32x96xf32, #tpu.memory_space<vmem>>, %arg3: memref<1x96xf32, #tpu.memory_space<vmem>>, %arg4: memref<16x96xf32, #tpu.memory_space<vmem>>) attributes {dimension_semantics = [#tpu.dimension_semantics<parallel>], iteration_bounds = array<i64: 1>, scalar_prefetch = 0 : i64, scratch_operands = 0 : i64, tpu.core_type = #tpu.core_type<tc>, window_params = [{transform_indices = @transform_0, window_bounds = array<i64: 16, 32>}, {pipeline_mode = #tpu.pipeline_mode<synchronous>, transform_indices = @transform_1, window_bounds = array<i64: 32, 96>}, {pipeline_mode = #tpu.pipeline_mode<synchronous>, transform_indices = @transform_2, window_bounds = array<i64: 1, 96>}, {transform_indices = @transform_3, window_bounds = array<i64: 16, 96>}]} {
    %c0 = arith.constant 0 : index
    %c0_0 = arith.constant 0 : index
    %0 = vector.load %arg1[%c0, %c0_0] : memref<16x32xf32, #tpu.memory_space<vmem>>, vector<16x32xf32>
    %c0_1 = arith.constant 0 : index
    %c0_2 = arith.constant 0 : index
    %1 = vector.load %arg2[%c0_1, %c0_2] : memref<32x96xf32, #tpu.memory_space<vmem>>, vector<32x96xf32>
    %cst = arith.constant dense<0.000000e+00> : vector<16x96xf32>
    %2 = tpu.matmul %0, %1, %cst {dimension_numbers = #tpu.dot_dimension_numbers<[1], [0], [0], [1], [0, 0, 1, 1], [], []>} : vector<16x32xf32>, vector<32x96xf32>, vector<16x96xf32> -> vector<16x96xf32>
    %c0_3 = arith.constant 0 : index
    %c0_4 = arith.constant 0 : index
    %3 = vector.load %arg3[%c0_3, %c0_4] : memref<1x96xf32, #tpu.memory_space<vmem>>, vector<1x96xf32>
    %4 = vector.broadcast %3 : vector<1x96xf32> to vector<16x96xf32>
    %5 = arith.addf %2, %4 : vector<16x96xf32>
    %c0_5 = arith.constant 0 : index
    %c0_6 = arith.constant 0 : index
    %6 = vector.load %arg4[%c0_5, %c0_6] : memref<16x96xf32, #tpu.memory_space<vmem>>, vector<16x96xf32>
    tpu.vector_store %arg4[%c0_5, %c0_6], %5 {strides = array<i32>} : memref<16x96xf32, #tpu.memory_space<vmem>>, vector<16x96xf32>,
    return
  }
  func.func @transform_0(%arg0: i32) -> (i32, i32) {
    %c0_i32 = arith.constant 0 : i32
    %c0_i32_0 = arith.constant 0 : i32
    return %arg0, %c0_i32 : i32, i32
  }
  func.func @transform_1(%arg0: i32) -> (i32, i32) {
    %c0_i32 = arith.constant 0 : i32
    %c0_i32_0 = arith.constant 0 : i32
    %c0_i32_1 = arith.constant 0 : i32
    return %c0_i32, %c0_i32_0 : i32, i32
  }
  func.func @transform_2(%arg0: i32) -> (i32, i32) {
    %c0_i32 = arith.constant 0 : i32
    %c0_i32_0 = arith.constant 0 : i32
    %c0_i32_1 = arith.constant 0 : i32
    return %c0_i32, %c0_i32_0 : i32, i32
  }
  func.func @transform_3(%arg0: i32) -> (i32, i32) {
    %c0_i32 = arith.constant 0 : i32
    %c0_i32_0 = arith.constant 0 : i32
    return %arg0, %c0_i32 : i32, i32
  }
}

</mosaic_0001>

<bundles_post_ra>
// kernel: tpu_custom_call.1
= control target key start
LH: loop header
LB: loop body
LE: loop exit
PB: predicated region body
PF: predicated region fallthrough
CT: control target
= control target key end

     0   :  { %8 = vsyncpa [#allocation3], 0  ;;  %s337_s0 = inlined_call_operand.hbm [shape: f32[16,32], index: 0, kind: input, shape index: {}]   ;;  %s338_s1 = inlined_call_operand.hbm [shape: f32[32,96], index: 1, kind: input, shape index: {}]   ;;  %s339_s2 = inlined_call_operand.vmem [shape: f32[1,96], index: 2, kind: input, shape index: {}]   ;;  %s340_s3 = inlined_call_operand.hbm [shape: f32[16,96], index: 3, kind: output, shape index: {}]  }
   0x1   :  { %9 = vsyncpa [#allocation6], 0 }
   0x2   :  { %10 = vsyncpa [#allocation4], 0  ;;  %s264_s12 = smov [#allocation2]   ;;  %s192_s16 = scalar_lea.hbm %s337_s0, 256 }
   0x3   :  { %s16_s13 = sshll.u32 %s264_s12, 4  ;;  %p193_p0 = scmp.ne.s32.totalorder %s337_s0, %s192_s16  ;;  %s17_s13 = int_to_ptr.vmem [resolvable:$true] %s16_s13 }
   0x4   :  { %p196_p1 = scmp.lt.u32.totalorder %s192_s16, %s337_s0 }
   0x6   :  { %p198_p2 = pnand %p196_p1, %p193_p0 }
   0x8   :  { %201 = shalt.err (!%p198_p2)
}
   0x9   :  { %s202_s21 = scalar_lea.vmem %s17_s13, 256  ;;  %p207_p4 = scmp.lt.s32.totalorder %s17_s13, %s17_s13 }
   0xa   :  { %p203_p3 = scmp.ne.s32.totalorder %s17_s13, %s202_s21  ;;  %p208_p5 = scmp.lt.s32.totalorder %s202_s21, %s202_s21 }
   0xc   :  { %p209_p6 = por %p208_p5, %p207_p4 }
   0xe   :  { %p210_p7 = pnand %p209_p6, %p203_p3 }
  0x10   :  { %213 = shalt.err (!%p210_p7)
}
  0x11   :  { %s265_s22 = smov 128   ;;  %s266_s23 = smov 8  }
  0x12   :  { %22 = dma.hbm_to_vmem [thread:$0]  %s337_s0, 256, %s17_s13, [#allocation3], %s265_s22, %s265_s22, %s266_s23  }
  0x13   :  { %s267_s26 = smov [#allocation5]   ;;  %s214_s30 = scalar_lea.hbm %s338_s1, 512 }
  0x14   :  { %s28_s27 = sshll.u32 %s267_s26, 4  ;;  %p215_p8 = scmp.ne.s32.totalorder %s338_s1, %s214_s30  ;;  %s29_s27 = int_to_ptr.vmem [resolvable:$true] %s28_s27 }
  0x15   :  { %p218_p9 = scmp.lt.u32.totalorder %s214_s30, %s338_s1 }
  0x17   :  { %p220_p10 = pnand %p218_p9, %p215_p8 }
  0x19   :  { %223 = shalt.err (!%p220_p10)
}
  0x1a   :  { %s224_s8 = scalar_lea.vmem %s29_s27, 512  ;;  %p229_p12 = scmp.lt.s32.totalorder %s29_s27, %s29_s27 }
  0x1b   :  { %p225_p11 = scmp.ne.s32.totalorder %s29_s27, %s224_s8  ;;  %p230_p13 = scmp.lt.s32.totalorder %s224_s8, %s224_s8 }
  0x1d   :  { %p231_p0 = por %p230_p13, %p229_p12 }
  0x1f   :  { %p232_p1 = pnand %p231_p0, %p225_p11 }
  0x21   :  { %235 = shalt.err (!%p232_p1)
}
  0x22   :  { %34 = dma.hbm_to_vmem [thread:$0]  %s338_s1, 512, %s29_s27, [#allocation6], %s265_s22, %s265_s22, %s266_s23  }
  0x23   :  { %258 = dma.done.wait [#allocation3], 256  }
  0x24   :  { %259 = vsyncadd [#allocation3], 4294967040 }
  0x25   :  { %260 = dma.done.wait [#allocation6], 512  }
  0x26   :  { %261 = vsyncadd [#allocation6], 4294966784  ;;  %vm56_vm0 = vcmask 261120   ;;  %v45_v0 = vld [vmem:[#allocation5] sm:$0xff]  ;;  %v46_v1 = vld [vmem:[#allocation5 + $0x8] sm:$0xff]  ;;  %s268_s11 = smov [#allocation7]  }
  0x27   :  { %v47_v2 = vld [vmem:[#allocation5 + $0x10] sm:$0xff]  ;;  %v179_v3 = vpack.c.bf16 %v46_v1, %v45_v0  ;;  %v48_v4 = vld [vmem:[#allocation5 + $0x18] sm:$0xff]  ;;  %s146_s12 = sshll.u32 %s268_s11, 4  ;;  %vm138_vm1 = vcmask 785408   ;;  %s147_s12 = int_to_ptr.vmem [resolvable:$true] %s146_s12 }
  0x28   :  { %v43_v5 = vld [vmem:[#allocation2] sm:$0xff]  ;;  %v183_v6 = vpack.c.bf16 %v48_v4, %v47_v2  ;;  %v44_v7 = vld [vmem:[#allocation2 + $0x8] sm:$0xff]  ;;  %s236_s13 = scalar_lea.vmem %s147_s12, 256  ;;  %p241_p3 = scmp.lt.s32.totalorder %s147_s12, %s147_s12 }
  0x29   :  { %176 = vmatprep.mubr.msk.f32.mxu0 %vm56_vm0, %v43_v5  ;;  %180 = vmatprep.subr.bf16.mxu0 %v179_v3  ;;  %v159_v8 = vld [vmem:[%s339_s2] ss:$0 sm:$0xff]  ;;  %p237_p2 = scmp.ne.s32.totalorder %s147_s12, %s236_s13  ;;  %p242_p4 = scmp.lt.s32.totalorder %s236_s13, %s236_s13 }
  0x2a   :  { %182 = vmatpush3.bf16.msra.mxu0 %v179_v3 }
  0x2b   :  { %184 = vmatprep.subr.bf16.mxu0 %v183_v6  ;;  %p243_p5 = por %p242_p4, %p241_p3 }
  0x2d   :  { %p244_p6 = pnand %p243_p5, %p237_p2 }
  0x2e   :  { %186 = vmatpush3.bf16.msra.mxu0 %v183_v6 }
  0x31   :  { %177 = vmatmul.mubr.msk.f32.vlgmr.msra.gmra.mrb[0].mxu0 %vm56_vm0, %v44_v7 }
 0x104   :  { %v178_v9 = vpop.f32.mrb[0].mxu0 }
 0x105   :  { %v135_v10 = vadd.f32 %v178_v9, %v159_v8  ;;  %v129_v11 = vpop.f32.mrb[1].mxu0 }
 0x106   :  { %v130_v12 = vadd.f32 %v159_v8, %v129_v11 }
 0x107   :  { %140 = vst.msk [vmem:[#allocation7 + $0x8] sm:$0xff] %vm138_vm1, %v135_v10 }
 0x108   :  { %139 = vst.msk [vmem:[#allocation7] sm:$0xff] %vm138_vm1, %v130_v12 }
 0x109   :  { %247 = shalt.err (!%p244_p6)
}
 0x10a   :  { %s248_s2 = scalar_lea.hbm %s340_s3, 256 }
 0x10b   :  { %p249_p7 = scmp.ne.s32.totalorder %s340_s3, %s248_s2  ;;  %p252_p8 = scmp.lt.u32.totalorder %s248_s2, %s340_s3 }
 0x10d   :  { %p254_p9 = pnand %p252_p8, %p249_p7 }
 0x10f   :  { %257 = shalt.err (!%p254_p9)
}
 0x110   :  { %152 = dma.vmem_to_hbm [thread:$0]  %s147_s12, 256, %s340_s3, [#allocation4], %s265_s22, %s265_s22, %s266_s23  }
 0x111   :  { %262 = dma.done.wait [#allocation4], 256  }
 0x112   :  { %263 = vsyncadd [#allocation4], 4294967040 }
 0x113   :  { %156 = vsyncpa [#allocation3], 1 }
 0x114   :  { %157 = vsyncpa [#allocation6], 1 }
 0x115   :  { %158 = vsyncpa [#allocation4], 1 }

</bundles_post_ra>
